<compile_context>
chip_gen: v6e
topology: v6e:2x2x1
jax: 0.10.0
libtpu: 0.0.40
codegen_flags: <defaults>
</compile_context>

<pallas_src>
import functools

import jax
import jax.numpy as jnp
from jax import lax
from jax.experimental import pallas as pl
from jax.experimental.pallas import tpu as pltpu

NUM_NEURONS = 128   # numNeurons
VOCAB_SIZE = 256    # vocabSize
LN_EPS = 1e-5       # torch.nn.LayerNorm default eps


def _logits_kernel(scales_ref,            # SMEM (2,): [sig(rawScale), sig(outScale)]
                   x_ref,                 # (tb, N) f32
                   w_ref,                 # (N, V) f32, pre-scaled by 1/sqrt(N)
                   nparams_ref,           # (2, N) f32: [sig(s1)*g1 ; sig(s1)*b1]
                   vparams_ref,           # (3, V) f32: [l_bias ; sig(s3)*g2 ; sig(s3)*b2]
                   o_ref,                 # (tb, V) f32
                   *, num_neurons, vocab_size):
    x = x_ref[...]                                            # (tb, N) f32

    raw_s = scales_ref[0]     # sigmoid(rawActivationsScale)
    out_s = scales_ref[1]     # sigmoid(outputScale)

    g1s = nparams_ref[0:1, :]      # sig(normedActivationsScale) * ln1_gamma
    be1s = nparams_ref[1:2, :]     # sig(normedActivationsScale) * ln1_beta
    bias = vparams_ref[0:1, :]
    g2s = vparams_ref[1:2, :]      # sig(normOutputScale) * ln2_gamma
    be2s = vparams_ref[2:3, :]     # sig(normOutputScale) * ln2_beta

    # --- activationNorm (LayerNorm over numNeurons), single-pass stats ---
    n_inv = 1.0 / float(num_neurons)
    s1 = jnp.sum(x, axis=-1, keepdims=True)
    s2 = jnp.sum(x * x, axis=-1, keepdims=True)               # independent XLU reduce
    mu1 = s1 * n_inv
    var1 = jnp.maximum(s2 * n_inv - mu1 * mu1, 0.0)
    rstd1 = lax.rsqrt(var1 + LN_EPS)

    # scaled = clamp(x*raw_s + LN1(x)*nrm_s, -10, 10)  (nrm_s folded into g1s/be1s)
    scaled = jnp.clip(x * raw_s + (x - mu1) * rstd1 * g1s + be1s, -10.0, 10.0)

    # --- logits = scaled @ (W/sqrt(N)) + b, f32 MXU operands / f32 accumulate ---
    logits = jnp.dot(scaled, w_ref[...], preferred_element_type=jnp.float32)
    logits = jnp.clip(logits + bias, -60.0, 60.0)

    # --- logitNorm (LayerNorm over vocabSize), single-pass stats ---
    v_inv = 1.0 / float(vocab_size)
    t1 = jnp.sum(logits, axis=-1, keepdims=True)
    t2 = jnp.sum(logits * logits, axis=-1, keepdims=True)
    mu2 = t1 * v_inv
    var2 = jnp.maximum(t2 * v_inv - mu2 * mu2, 0.0)
    rstd2 = lax.rsqrt(var2 + LN_EPS)

    # final = logits*out_s + LN2(logits)*nout_s, with nout_s folded into g2s/be2s
    #       = logits*(out_s + g2s*rstd2) + (be2s - g2s*rstd2*mu2)
    gr = g2s * rstd2                                           # (tb, V)
    o_ref[...] = logits * (out_s + gr) + (be2s - gr * mu2)


def _round_up(x, m):
    return -(-x // m) * m


def _choose_tile_b(batch):
    """Batch tile: single step for tiny B; >=2 steps (both v7x TCs) for B>=16;
    ~1024-row tiles (>=4 steps) for large B to amortize per-step overhead."""
    if batch < 16:
        return batch                                  # single step, block == full dim
    if batch <= 256:
        return _round_up(-(-batch // 2), 8)           # exactly 2 parallel steps
    return min(1024, _round_up(-(-batch // 4), 8))    # >=4 steps, <=1024 rows/step


def logits_forward(acts, params, *, tile_b=None):
    """acts: (B, numNeurons) f32.  Returns finalLogit (B, vocabSize) f32."""
    acts = acts.astype(jnp.float32)
    B, N = acts.shape
    V = params["l_weights"].shape[1]
    assert N == NUM_NEURONS

    if tile_b is None:
        tile_b = _choose_tile_b(B)

    pad = (-B) % tile_b
    if pad:
        acts = jnp.pad(acts, ((0, pad), (0, 0)))
    Bp = B + pad

    sig = jax.nn.sigmoid
    raw_s = sig(params["rawActivationsScale"].astype(jnp.float32))
    nrm_s = sig(params["normedActivationsScale"].astype(jnp.float32))
    out_s = sig(params["outputScale"].astype(jnp.float32))
    nout_s = sig(params["normOutputScale"].astype(jnp.float32))

    # Scalar gates that stay scalar in-kernel (SMEM).
    scales = jnp.stack([raw_s, out_s]).astype(jnp.float32)               # (2,)

    # 1/sqrt(N) folded into the weights (linearity; pure exponent shift).
    w_scaled = (params["l_weights"].astype(jnp.float32) *
                jnp.float32(N ** -0.5))                                  # (N, V) f32

    # LN gate sigmoids folded into gamma/beta on the host.
    nparams = jnp.stack([nrm_s * params["ln1_gamma"],
                         nrm_s * params["ln1_beta"]]).astype(jnp.float32)   # (2, N)
    vparams = jnp.stack([params["l_bias"],
                         nout_s * params["ln2_gamma"],
                         nout_s * params["ln2_beta"]]).astype(jnp.float32)  # (3, V)

    kernel = functools.partial(_logits_kernel, num_neurons=N, vocab_size=V)

    out = pl.pallas_call(
        kernel,
        out_shape=jax.ShapeDtypeStruct((Bp, V), jnp.float32),
        grid_spec=pltpu.PrefetchScalarGridSpec(
            num_scalar_prefetch=0,
            grid=(Bp // tile_b,),
            in_specs=[
                pl.BlockSpec(memory_space=pltpu.MemorySpace.SMEM),    # gates
                pl.BlockSpec((tile_b, N), lambda i: (i, 0)),          # acts
                pl.BlockSpec((N, V), lambda i: (0, 0)),               # weights (resident)
                pl.BlockSpec((2, N), lambda i: (0, 0)),               # ln1 gamma/beta (scaled)
                pl.BlockSpec((3, V), lambda i: (0, 0)),               # bias, ln2 gamma/beta (scaled)
            ],
            out_specs=pl.BlockSpec((tile_b, V), lambda i: (i, 0)),
        ),
        compiler_params=pltpu.CompilerParams(
            dimension_semantics=("parallel",)),
    )(scales, acts, w_scaled, nparams, vparams)

    return out[:B] if pad else out


def logits_forward_ref(acts, params):
    """Pure-JAX f32 reference of the PyTorch forward (for verification)."""
    x = acts.astype(jnp.float32)
    sig = jax.nn.sigmoid
    raw_s = sig(params["rawActivationsScale"])
    nrm_s = sig(params["normedActivationsScale"])
    out_s = sig(params["outputScale"])
    nout_s = sig(params["normOutputScale"])

    def ln(v, g, b):
        mu = jnp.mean(v, axis=-1, keepdims=True)
        var = jnp.mean((v - mu) ** 2, axis=-1, keepdims=True)
        return (v - mu) / jnp.sqrt(var + LN_EPS) * g + b

    ln1 = ln(x, params["ln1_gamma"], params["ln1_beta"])
    scaled = jnp.clip(x * raw_s + ln1 * nrm_s, -10.0, 10.0)
    logits = scaled @ params["l_weights"] / (x.shape[-1] ** 0.5) + params["l_bias"]
    logits = jnp.clip(logits, -60.0, 60.0)
    ln2 = ln(logits, params["ln2_gamma"], params["ln2_beta"])
    return logits * out_s + ln2 * nout_s


def init_params(key, num_neurons=NUM_NEURONS, vocab_size=VOCAB_SIZE):
    kw, = jax.random.split(key, 1)
    return {
        # nn.Parameter(torch.randn(numNeurons, vocabSize))
        "l_weights": jax.random.normal(kw, (num_neurons, vocab_size), jnp.float32),
        # nn.Parameter(torch.zeros(vocabSize))
        "l_bias": jnp.zeros((vocab_size,), jnp.float32),
        # LayerNorm(numNeurons): weight=1, bias=0
        "ln1_gamma": jnp.ones((num_neurons,), jnp.float32),
        "ln1_beta": jnp.zeros((num_neurons,), jnp.float32),
        # LayerNorm(vocabSize): weight=1, bias=0
        "ln2_gamma": jnp.ones((vocab_size,), jnp.float32),
        "ln2_beta": jnp.zeros((vocab_size,), jnp.float32),
        # scalar gates, init 0.5
        "rawActivationsScale": jnp.float32(0.5),
        "normedActivationsScale": jnp.float32(0.5),
        "outputScale": jnp.float32(0.5),
        "normOutputScale": jnp.float32(0.5),
    }


if __name__ == "__main__":
    key = jax.random.PRNGKey(0)
    k_x, k_p = jax.random.split(key)

    B = 16  # batch of mean-activation rows (numTokensPerStep-sized window)
    acts = jax.random.normal(k_x, (B, NUM_NEURONS), jnp.float32)
    params = init_params(k_p)

    out = logits_forward(acts, params)   # tile_b auto -> 2 parallel grid steps of 8 rows
    out = jax.block_until_ready(out)

    ref = logits_forward_ref(acts, params)
    assert out.shape == (B, VOCAB_SIZE)
    # f32 MXU operands; differences are only f32 rounding (single-pass variance,
    # host-folded gate scalars).
    assert jnp.allclose(out, ref, atol=1e-3, rtol=1e-3), "mismatch vs reference"

    print("KERNEL_OK")
</pallas_src>

<mosaic_0001>
module attributes {stable_mosaic.version = 11 : i64} {
  func.func @_logits_kernel(%arg0: i32, %arg1: memref<2xf32, #tpu.memory_space<smem>>, %arg2: memref<8x128xf32, #tpu.memory_space<vmem>>, %arg3: memref<128x256xf32, #tpu.memory_space<vmem>>, %arg4: memref<2x128xf32, #tpu.memory_space<vmem>>, %arg5: memref<3x256xf32, #tpu.memory_space<vmem>>, %arg6: memref<8x256xf32, #tpu.memory_space<vmem>>) attributes {dimension_semantics = [#tpu.dimension_semantics<parallel>], iteration_bounds = array<i64: 2>, scalar_prefetch = 0 : i64, scratch_operands = 0 : i64, tpu.core_type = #tpu.core_type<tc>, window_params = [{transform_indices = @transform_0, window_bounds = array<i64: 2>}, {transform_indices = @transform_1, window_bounds = array<i64: 8, 128>}, {pipeline_mode = #tpu.pipeline_mode<synchronous>, transform_indices = @transform_2, window_bounds = array<i64: 128, 256>}, {pipeline_mode = #tpu.pipeline_mode<synchronous>, transform_indices = @transform_3, window_bounds = array<i64: 2, 128>}, {pipeline_mode = #tpu.pipeline_mode<synchronous>, transform_indices = @transform_4, window_bounds = array<i64: 3, 256>}, {transform_indices = @transform_5, window_bounds = array<i64: 8, 256>}]} {
    %c0 = arith.constant 0 : index
    %c0_0 = arith.constant 0 : index
    %0 = vector.load %arg2[%c0, %c0_0] : memref<8x128xf32, #tpu.memory_space<vmem>>, vector<8x128xf32>
    %c0_1 = arith.constant 0 : index
    %1 = memref.load %arg1[%c0_1] : memref<2xf32, #tpu.memory_space<smem>>
    %c1 = arith.constant 1 : index
    %2 = memref.load %arg1[%c1] : memref<2xf32, #tpu.memory_space<smem>>
    %c0_2 = arith.constant 0 : index
    %c0_3 = arith.constant 0 : index
    %3 = vector.load %arg4[%c0_2, %c0_3] : memref<2x128xf32, #tpu.memory_space<vmem>>, vector<1x128xf32>
    %c1_4 = arith.constant 1 : index
    %c0_5 = arith.constant 0 : index
    %4 = vector.load %arg4[%c1_4, %c0_5] : memref<2x128xf32, #tpu.memory_space<vmem>>, vector<1x128xf32>
    %c0_6 = arith.constant 0 : index
    %c0_7 = arith.constant 0 : index
    %5 = vector.load %arg5[%c0_6, %c0_7] : memref<3x256xf32, #tpu.memory_space<vmem>>, vector<1x256xf32>
    %c1_8 = arith.constant 1 : index
    %c0_9 = arith.constant 0 : index
    %6 = vector.load %arg5[%c1_8, %c0_9] : memref<3x256xf32, #tpu.memory_space<vmem>>, vector<1x256xf32>
    %c2 = arith.constant 2 : index
    %c0_10 = arith.constant 0 : index
    %7 = vector.load %arg5[%c2, %c0_10] : memref<3x256xf32, #tpu.memory_space<vmem>>, vector<1x256xf32>
    %cst = arith.constant dense<0.000000e+00> : vector<8xf32>
    %8 = vector.multi_reduction <add>, %0, %cst [1] : vector<8x128xf32> to vector<8xf32>
    %9 = vector.shape_cast %8 : vector<8xf32> to vector<8x1xf32>
    %10 = arith.mulf %0, %0 : vector<8x128xf32>
    %cst_11 = arith.constant dense<0.000000e+00> : vector<8xf32>
    %11 = vector.multi_reduction <add>, %10, %cst_11 [1] : vector<8x128xf32> to vector<8xf32>
    %12 = vector.shape_cast %11 : vector<8xf32> to vector<8x1xf32>
    %cst_12 = arith.constant 7.812500e-03 : f32
    %13 = vector.broadcast %cst_12 : f32 to vector<8x1xf32>
    %14 = arith.mulf %9, %13 : vector<8x1xf32>
    %cst_13 = arith.constant 7.812500e-03 : f32
    %15 = vector.broadcast %cst_13 : f32 to vector<8x1xf32>
    %16 = arith.mulf %12, %15 : vector<8x1xf32>
    %17 = arith.mulf %14, %14 : vector<8x1xf32>
    %18 = arith.subf %16, %17 : vector<8x1xf32>
    %cst_14 = arith.constant 0.000000e+00 : f32
    %19 = vector.broadcast %cst_14 : f32 to vector<8x1xf32>
    %20 = arith.maximumf %18, %19 : vector<8x1xf32>
    %cst_15 = arith.constant 9.99999974E-6 : f32
    %21 = vector.broadcast %cst_15 : f32 to vector<8x1xf32>
    %22 = arith.addf %20, %21 : vector<8x1xf32>
    %23 = math.rsqrt %22 : vector<8x1xf32>
    %24 = vector.broadcast %1 : f32 to vector<8x128xf32>
    %25 = arith.mulf %0, %24 : vector<8x128xf32>
    %26 = vector.broadcast %14 : vector<8x1xf32> to vector<8x128xf32>
    %27 = arith.subf %0, %26 : vector<8x128xf32>
    %28 = vector.broadcast %23 : vector<8x1xf32> to vector<8x128xf32>
    %29 = arith.mulf %27, %28 : vector<8x128xf32>
    %30 = vector.broadcast %3 : vector<1x128xf32> to vector<8x128xf32>
    %31 = arith.mulf %29, %30 : vector<8x128xf32>
    %32 = arith.addf %25, %31 : vector<8x128xf32>
    %33 = vector.broadcast %4 : vector<1x128xf32> to vector<8x128xf32>
    %34 = arith.addf %32, %33 : vector<8x128xf32>
    %cst_16 = arith.constant -1.000000e+01 : f32
    %cst_17 = arith.constant 1.000000e+01 : f32
    %35 = vector.broadcast %cst_16 : f32 to vector<8x128xf32>
    %36 = arith.maximumf %35, %34 : vector<8x128xf32>
    %37 = vector.broadcast %cst_17 : f32 to vector<8x128xf32>
    %38 = arith.minimumf %37, %36 : vector<8x128xf32>
    %c0_18 = arith.constant 0 : index
    %c0_19 = arith.constant 0 : index
    %39 = vector.load %arg3[%c0_18, %c0_19] : memref<128x256xf32, #tpu.memory_space<vmem>>, vector<128x256xf32>
    %cst_20 = arith.constant dense<0.000000e+00> : vector<8x256xf32>
    %40 = tpu.matmul %38, %39, %cst_20 {dimension_numbers = #tpu.dot_dimension_numbers<[1], [0], [0], [1], [0, 0, 1, 1], [], []>} : vector<8x128xf32>, vector<128x256xf32>, vector<8x256xf32> -> vector<8x256xf32>
    %41 = vector.broadcast %5 : vector<1x256xf32> to vector<8x256xf32>
    %42 = arith.addf %40, %41 : vector<8x256xf32>
    %cst_21 = arith.constant -6.000000e+01 : f32
    %cst_22 = arith.constant 6.000000e+01 : f32
    %43 = vector.broadcast %cst_21 : f32 to vector<8x256xf32>
    %44 = arith.maximumf %43, %42 : vector<8x256xf32>
    %45 = vector.broadcast %cst_22 : f32 to vector<8x256xf32>
    %46 = arith.minimumf %45, %44 : vector<8x256xf32>
    %cst_23 = arith.constant dense<0.000000e+00> : vector<8xf32>
    %47 = vector.multi_reduction <add>, %46, %cst_23 [1] : vector<8x256xf32> to vector<8xf32>
    %48 = vector.shape_cast %47 : vector<8xf32> to vector<8x1xf32>
    %49 = arith.mulf %46, %46 : vector<8x256xf32>
    %cst_24 = arith.constant dense<0.000000e+00> : vector<8xf32>
    %50 = vector.multi_reduction <add>, %49, %cst_24 [1] : vector<8x256xf32> to vector<8xf32>
    %51 = vector.shape_cast %50 : vector<8xf32> to vector<8x1xf32>
    %cst_25 = arith.constant 3.906250e-03 : f32
    %52 = vector.broadcast %cst_25 : f32 to vector<8x1xf32>
    %53 = arith.mulf %48, %52 : vector<8x1xf32>
    %cst_26 = arith.constant 3.906250e-03 : f32
    %54 = vector.broadcast %cst_26 : f32 to vector<8x1xf32>
    %55 = arith.mulf %51, %54 : vector<8x1xf32>
    %56 = arith.mulf %53, %53 : vector<8x1xf32>
    %57 = arith.subf %55, %56 : vector<8x1xf32>
    %cst_27 = arith.constant 0.000000e+00 : f32
    %58 = vector.broadcast %cst_27 : f32 to vector<8x1xf32>
    %59 = arith.maximumf %57, %58 : vector<8x1xf32>
    %cst_28 = arith.constant 9.99999974E-6 : f32
    %60 = vector.broadcast %cst_28 : f32 to vector<8x1xf32>
    %61 = arith.addf %59, %60 : vector<8x1xf32>
    %62 = math.rsqrt %61 : vector<8x1xf32>
    %63 = vector.broadcast %6 : vector<1x256xf32> to vector<8x256xf32>
    %64 = vector.broadcast %62 : vector<8x1xf32> to vector<8x256xf32>
    %65 = arith.mulf %63, %64 : vector<8x256xf32>
    %66 = vector.broadcast %2 : f32 to vector<8x256xf32>
    %67 = arith.addf %66, %65 : vector<8x256xf32>
    %68 = arith.mulf %46, %67 : vector<8x256xf32>
    %69 = vector.broadcast %53 : vector<8x1xf32> to vector<8x256xf32>
    %70 = arith.mulf %65, %69 : vector<8x256xf32>
    %71 = vector.broadcast %7 : vector<1x256xf32> to vector<8x256xf32>
    %72 = arith.subf %71, %70 : vector<8x256xf32>
    %73 = arith.addf %68, %72 : vector<8x256xf32>
    %c0_29 = arith.constant 0 : index
    %c0_30 = arith.constant 0 : index
    %74 = vector.load %arg6[%c0_29, %c0_30] : memref<8x256xf32, #tpu.memory_space<vmem>>, vector<8x256xf32>
    tpu.vector_store %arg6[%c0_29, %c0_30], %73 {strides = array<i32>} : memref<8x256xf32, #tpu.memory_space<vmem>>, vector<8x256xf32>,
    return
  }
  func.func @transform_0(%arg0: i32) -> i32 {
    %c0_i32 = arith.constant 0 : i32
    %c0_i32_0 = arith.constant 0 : i32
    return %c0_i32 : i32
  }
  func.func @transform_1(%arg0: i32) -> (i32, i32) {
    %c0_i32 = arith.constant 0 : i32
    %c0_i32_0 = arith.constant 0 : i32
    return %arg0, %c0_i32 : i32, i32
  }
  func.func @transform_2(%arg0: i32) -> (i32, i32) {
    %c0_i32 = arith.constant 0 : i32
    %c0_i32_0 = arith.constant 0 : i32
    %c0_i32_1 = arith.constant 0 : i32
    return %c0_i32, %c0_i32_0 : i32, i32
  }
  func.func @transform_3(%arg0: i32) -> (i32, i32) {
    %c0_i32 = arith.constant 0 : i32
    %c0_i32_0 = arith.constant 0 : i32
    %c0_i32_1 = arith.constant 0 : i32
    return %c0_i32, %c0_i32_0 : i32, i32
  }
  func.func @transform_4(%arg0: i32) -> (i32, i32) {
    %c0_i32 = arith.constant 0 : i32
    %c0_i32_0 = arith.constant 0 : i32
    %c0_i32_1 = arith.constant 0 : i32
    return %c0_i32, %c0_i32_0 : i32, i32
  }
  func.func @transform_5(%arg0: i32) -> (i32, i32) {
    %c0_i32 = arith.constant 0 : i32
    %c0_i32_0 = arith.constant 0 : i32
    return %arg0, %c0_i32 : i32, i32
  }
}

</mosaic_0001>

<bundles_post_ra>
// kernel: tpu_custom_call.1
= control target key start
LH: loop header
LB: loop body
LE: loop exit
PB: predicated region body
PF: predicated region fallthrough
CT: control target
= control target key end

     0   :  { %10 = vsyncpa [#allocation5], 0  ;;  %s1111_s0 = inlined_call_operand.hbm [shape: f32[2], index: 0, kind: input, shape index: {}]   ;;  %s1112_s1 = inlined_call_operand.hbm [shape: f32[16,128], index: 1, kind: input, shape index: {}]   ;;  %s1113_s2 = inlined_call_operand.hbm [shape: f32[128,256], index: 2, kind: input, shape index: {}]   ;;  %s1114_s3 = inlined_call_operand.vmem [shape: f32[2,128], index: 3, kind: input, shape index: {}]   ;;  %s1115_s4 = inlined_call_operand.hbm [shape: f32[3,256], index: 4, kind: input, shape index: {}]   ;;  %s1116_s5 = inlined_call_operand.hbm [shape: f32[16,256], index: 5, kind: output, shape index: {}]  }
   0x1   :  { %11 = vsyncpa [#allocation3], 0 }
   0x2   :  { %13 = vsyncpa [#allocation3 + $0x1], 0 }
   0x3   :  { %14 = vsyncpa [#allocation8], 0 }
   0x4   :  { %15 = vsyncpa [#allocation4], 0 }
   0x5   :  { %17 = vsyncpa [#allocation4 + $0x1], 0  ;;  %s917_s18 = smov 0   ;;  %s919_s19 = smov 0  }
   0x6   :  { %s921_s20 = smov 0   ;;  %s923_s21 = smov 0  }
   0x7 LB: > { %s938_s22 = sadd.s32 4294967295, %s877_s21   ;;  %s604_s23 = sadd.s32 4294967294, %s877_s21   ;;  %s877_s21 = sphi %s923_s21, %s1139_s21   ;;  %s873_s20 = sphi %s921_s20, %s1138_s20   ;;  %s869_s19 = sphi %s919_s19, %s1137_s19   ;;  %s865_s18 = sphi %s917_s18, %s1136_s18  }
   0x8   : > { %p64_p0 = scmp.ne.s32.totalorder %s869_s19, %s865_s18  ;;  %p1117_p1 = scmp.eq.s32.totalorder %s938_s22, 0 }
   0x9   : > { %p151_p2 = scmp.eq.s32.totalorder %s938_s22, 1  ;;  %p157_p3 = scmp.eq.s32.totalorder %s604_s23, 1 }
   0xa   : > { %p947_p4 = por %p1117_p1, %p64_p0  ;;  %p605_p5 = scmp.ge.s32.totalorder %s877_s21, 1 }
   0xb   : > { %p952_p6 = por %p157_p3, %p64_p0  ;;  %p164_p7 = scmp.lt.s32.totalorder %s877_s21, 3 }
   0xc   : > { %s1121_s24 = scalar_select %p947_p4, 1, 0 }
   0xd   : > { %s1122_s25 = scalar_select %p952_p6, 1, 0 }
   0xe   : > { %p957_p8 = pnand %p605_p5, %p164_p7  ;;  %s879_s27 = smov [#allocation7]  }
   0xf   : > { %s185_s28 = sshll.u32 %s879_s27, 4  ;;  %s880_s30 = smov [#allocation9]   ;;  %s186_s28 = int_to_ptr.vmem [resolvable:$true] %s185_s28 }
  0x10   : > { %s1123_s26 = scalar_select %p957_p8, 1, 0 }
  0x11   : > { %p646_p9 = pneg %p957_p8  ;;  %s202_s6 = sshll.u32 %s880_s30, 4  ;;  %s203_s6 = int_to_ptr.vmem [resolvable:$true] %s202_s6 }
  0x12   : > { %s725_s7 = scalar_lea.vmem %s186_s28, 4096  ;;  %p733_p5 = scmp.lt.s32.totalorder %s186_s28, %s186_s28 }
  0x13   : > { %p966_p11 = pnand %p646_p9, %p1117_p1  ;;  %p726_p13 = scmp.ne.s32.totalorder %s186_s28, %s725_s7 }
  0x14   : > { %p734_p7 = scmp.lt.s32.totalorder %s725_s7, %s725_s7 }
  0x15   : > { %p716_p12 = pneg %p966_p11 }
  0x16   : > { %p735_p10 = por %p734_p7, %p733_p5 }
  0x17   : > { %p728_p0 = pnand %p726_p13, %p716_p12 }
  0x19   : > { %p729_p3 = pneg %p728_p0 }
  0x1b   : > { %p736_p9 = pnand %p735_p10, %p729_p3 }
  0x1d   : > { %739 = shalt.err (!%p736_p9)
}
  0x1e   : > { %s881_s8 = smov 256   ;;  %s882_s9 = smov 16  }
  0x1f   : > { %652 = dma.hbm_to_vmem [thread:$0]  (!%p966_p11), %s1113_s2, 4096, %s186_s28, [#allocation8], %s881_s8, %s881_s8, %s882_s9  }
  0x20   : > { %s883_s12 = smov [#allocation2]   ;;  %s762_s15 = scalar_lea.vmem %s203_s6, 128 }
  0x21   : > { %649 = dma.hbm_to_smem (!%p966_p11), %s1111_s0, 16, %s883_s12, [#allocation5]  }
  0x22   : > { %p763_p13 = scmp.ne.s32.totalorder %s203_s6, %s762_s15  ;;  %p770_p3 = scmp.lt.s32.totalorder %s203_s6, %s203_s6 }
  0x23   : > { %p771_p5 = scmp.lt.s32.totalorder %s762_s15, %s762_s15 }
  0x24   : > { %p765_p10 = pnand %p763_p13, %p716_p12 }
  0x25   : > { %p772_p7 = por %p771_p5, %p770_p3 }
  0x26   : > { %p766_p0 = pneg %p765_p10 }
  0x28   : > { %p773_p9 = pnand %p772_p7, %p766_p0 }
  0x2a   : > { %776 = shalt.err (!%p773_p9)
}
  0x2b   : > { %655 = dma.hbm_to_vmem [thread:$0]  (!%p966_p11), %s1115_s4, 128, %s203_s6, [#allocation8]  }
  0x2c   : > { %s994_s23 = sadd.s32 1, %s877_s21   ;;  %s51_s28 = sadd.s32 1, %s873_s20 }
  0x2d   : > { %s48_s27 = ssub.s32 %s877_s21, %s994_s23  ;;  %p58_p13 = scmp.ne.s32.totalorder %s873_s20, %s869_s19 }
  0x2e   : > { %p49_p12 = scmp.eq.s32.totalorder %s48_s27, 0  ;;  %p59_p10 = scmp.eq.s32.totalorder %s877_s21, 0 }
  0x2f   : > { %p667_p0 = scmp.lt.s32.totalorder %s877_s21, 2  ;;  %p1008_p5 = por %p151_p2, %p58_p13 }
  0x30   : > { %s1004_s29 = scalar_select %p49_p12, %s873_s20, %s51_s28  }
  0x31   : > { %p60_p3 = por %p59_p10, %p58_p13  ;;  %s213_s7 = sand.u32 1, %s873_s20  }
  0x32   : > { %s1125_s30 = scalar_select %p1008_p5, 1, 0 }
  0x33   : > { %s611_s8 = sshll.u32 %s877_s21, 7  ;;  %s610_s6 = sshll.u32 %s213_s7, 3 }
  0x34   : > { %s1017_s11 = scalar_lea.hbm %s1112_s1, %s611_s8  ;;  %s217_s12 = scalar_lea.vmem [#allocation6], %s610_s6 }
  0x35   : > { %s224_s13 = sshll.u32 %s217_s12, 4  ;;  %p1019_p11 = pnand %p667_p0, %p60_p3  ;;  %s225_s13 = int_to_ptr.vmem [resolvable:$true] %s224_s13 }
  0x36   : > { %s214_s15 = scalar_lea.sflag [#allocation3], %s213_s7  ;;  %s777_s16 = scalar_lea.hbm %s1017_s11, 128 }
  0x37   : > { %p778_p2 = scmp.ne.s32.totalorder %s1017_s11, %s777_s16  ;;  %p779_p7 = pneg %p1019_p11 }
  0x38   : > { %s782_s28 = scalar_lea.hbm %s1112_s1, 256  ;;  %p783_p13 = scmp.lt.s32.totalorder %s1017_s11, %s1112_s1 }
  0x39   : > { %p780_p9 = pnand %p779_p7, %p778_p2  ;;  %p784_p10 = scmp.lt.s32.totalorder %s782_s28, %s777_s16 }
  0x3b   : > { %p781_p12 = pneg %p780_p9  ;;  %p785_p0 = por %p784_p10, %p783_p13 }
  0x3d   : > { %p786_p3 = pnand %p785_p0, %p781_p12 }
  0x3f   : > { %789 = shalt.err (!%p786_p3)
}
  0x40   : > { %s790_s9 = scalar_lea.vmem %s225_s13, 128  ;;  %s884_s7 = smov [#allocation6]  }
  0x41   : > { %p791_p1 = scmp.ne.s32.totalorder %s225_s13, %s790_s9  ;;  %s795_s10 = sshll.u32 %s884_s7, 4  ;;  %s796_s10 = int_to_ptr.vmem [resolvable:$false] %s795_s10 }
  0x42   : > { %s797_s12 = scalar_lea.vmem %s796_s10, 256  ;;  %p798_p2 = scmp.lt.s32.totalorder %s225_s13, %s796_s10 }
  0x43   : > { %p793_p6 = pnand %p791_p1, %p779_p7  ;;  %p799_p9 = scmp.lt.s32.totalorder %s797_s12, %s790_s9 }
  0x45   : > { %p794_p5 = pneg %p793_p6  ;;  %p800_p4 = por %p799_p9, %p798_p2 }
  0x47   : > { %p801_p8 = pnand %p800_p4, %p794_p5 }
  0x49   : > { %804 = shalt.err (!%p801_p8)
}
  0x4a   : > { %659 = dma.hbm_to_vmem [thread:$0]  (!%p1019_p11), %s1017_s11, 128, %s225_s13, %s214_s15  }
  0x4b   : > { %p1127_p12 = scmp.ne.s32.totalorder %s1123_s26, 0 }
  0x4c   : > { %p1128_p13 = scmp.eq.s32.totalorder (!%p1127_p12), %s938_s22, 0 }
  0x4d   : > { %233 = sbr.rel (%p1127_p12) target bundleno = 653 (0x28d), region = 40 }
  0x52   : > { %848 = dma.done.wait (%p1128_p13), [#allocation5], 16   ;;  %p1129_p1 = pmov %p1128_p13 }
  0x53   : > { %s1044_s16 = sand.u32 1, %s869_s19   ;;  %p1130_p4 = scmp.ne.s32.totalorder %s1121_s24, 0 }
  0x54   : > { %850 = vsyncadd (%p1129_p1), [#allocation5], 4294967280  ;;  %s614_s17 = sshll.u32 %s1044_s16, 3  ;;  %s240_s27 = scalar_lea.sflag [#allocation3], %s1044_s16 }
  0x55   : > { %s243_s14 = scalar_lea.vmem [#allocation6], %s614_s17 }
  0x56   : > { %852 = dma.done.wait (%p1130_p4), %s240_s27, 128  }
  0x57   : > { %854 = vsyncadd (%p1130_p4), %s240_s27, 4294967168  ;;  %p1131_p6 = pmov %p1129_p1 }
  0x58   : > { %p1132_p8 = pmov %p1129_p1 }
  0x59   : > { %856 = dma.done.wait (%p1131_p6), [#allocation8], 4224  }
  0x5a   : > { %858 = vsyncadd (%p1132_p8), [#allocation8], 4294963072 }
  0x5b   : > { %256 = sfence }
  0x5c   : > { %v1056_v0 = vld [vmem:[%s243_s14] sm:$0xff]  ;;  %v347_v4 = vld [vmem:[#allocation7 + $0xe8] sm:$0xff]  ;;  %v346_v5 = vld [vmem:[#allocation7 + $0xe0] sm:$0xff]  ;;  %v885_v15 = vmov 0.0   ;;  %s280_s24 = sld [smem:[#allocation2]]  ;;  %v351_v54 = vlaneseq  ;;  %s617_s8 = sshll.u32 %s1044_s16, 4 }
  0x5d   : > { %289 = vadd.xlane.f32.xlu0 %v1056_v0  ;;  %v291_v1 = vmul.f32 %v1056_v0, %v1056_v0  ;;  %v349_v2 = vld [vmem:[#allocation7 + $0xf8] sm:$0xff]  ;;  %v348_v3 = vld [vmem:[#allocation7 + $0xf0] sm:$0xff]  ;;  %v343_v8 = vld [vmem:[#allocation7 + $0xc8] sm:$0xff]  ;;  %425 = vmatprep.mubr.f32.mxu0 %v885_v15  ;;  %s618_s28 = sld [smem:[#allocation2 + $0x1]]  ;;  %s629_s6 = sshll.u32 %s938_s22, 8 }
  0x5e   : > { %361 = vmatprep.subr.mxu0 %v349_v2  ;;  %v345_v6 = vld [vmem:[#allocation7 + $0xd8] sm:$0xff]  ;;  %v344_v7 = vld [vmem:[#allocation7 + $0xd0] sm:$0xff]  ;;  %v342_v9 = vld [vmem:[#allocation7 + $0xc0] sm:$0xff]  ;;  %v352_v55 = vshrl.u32 %v351_v54, 7  ;;  %s278_s9 = scalar_lea.vmem [#allocation10], %s617_s8  ;;  %s1074_s17 = scalar_lea.hbm %s1116_s5, %s629_s6 }
  0x5f   : > { %362 = vmatpush1.msra.mxu0 %v348_v3  ;;  %v341_v10 = vld [vmem:[#allocation7 + $0xb8] sm:$0xff]  ;;  %v340_v11 = vld [vmem:[#allocation7 + $0xb0] sm:$0xff]  ;;  %v339_v12 = vld [vmem:[#allocation7 + $0xa8] sm:$0xff]  ;;  %s503_s7 = sshll.u32 %s278_s9, 4  ;;  %s489_s27 = scalar_lea.sflag [#allocation4], %s1044_s16  ;;  %s504_s7 = int_to_ptr.vmem [resolvable:$true] %s503_s7 }
  0x60   : > { %363 = vmatprep.subr.mxu0 %v347_v4  ;;  %v338_v13 = vld [vmem:[#allocation7 + $0xa0] sm:$0xff]  ;;  %v337_v14 = vld [vmem:[#allocation7 + $0x98] sm:$0xff]  ;;  %v336_v16 = vld [vmem:[#allocation7 + $0x90] sm:$0xff]  ;;  %v353_v56 = vsub.s32 0, %v352_v55  ;;  %v357_v58 = vsub.s32 1, %v352_v55  ;;  %s805_s14 = scalar_lea.vmem %s504_s7, 256 }
  0x61   : > { %292 = vadd.xlane.f32.xlu0 %v291_v1  ;;  %364 = vmatpush1.msra.mxu0 %v346_v5  ;;  %v335_v17 = vld [vmem:[#allocation7 + $0x88] sm:$0xff]  ;;  %v334_v18 = vld [vmem:[#allocation7 + $0x80] sm:$0xff]  ;;  %v333_v19 = vld [vmem:[#allocation7 + $0x78] sm:$0xff]  ;;  %p806_p5 = scmp.ne.s32.totalorder %s504_s7, %s805_s14  ;;  %p1133_p11 = scmp.ne.s32.totalorder %s1125_s30, 0 }
  0x62   : > { %365 = vmatprep.subr.mxu0 %v345_v6  ;;  %v332_v20 = vld [vmem:[#allocation7 + $0x70] sm:$0xff]  ;;  %v331_v21 = vld [vmem:[#allocation7 + $0x68] sm:$0xff]  ;;  %v330_v22 = vld [vmem:[#allocation7 + $0x60] sm:$0xff]  ;;  %v301_v43 = vstv %s280_s24  ;;  %s886_s22 = smov [#allocation10]  }
  0x63   : > { %366 = vmatpush1.msra.mxu0 %v344_v7  ;;  %v329_v23 = vld [vmem:[#allocation7 + $0x58] sm:$0xff]  ;;  %v328_v24 = vld [vmem:[#allocation7 + $0x50] sm:$0xff]  ;;  %v327_v25 = vld [vmem:[#allocation7 + $0x48] sm:$0xff]  ;;  %v302_v47 = vmul.f32 %v301_v43, %v1056_v0  ;;  %p807_p7 = pnand %p806_p5, %p1133_p11  ;;  %s809_s24 = sshll.u32 %s886_s22, 4  ;;  %s810_s24 = int_to_ptr.vmem [resolvable:$false] %s809_s24 }
  0x64   : > { %367 = vmatprep.subr.mxu0 %v343_v8  ;;  %v326_v26 = vld [vmem:[#allocation7 + $0x40] sm:$0xff]  ;;  %v325_v27 = vld [vmem:[#allocation7 + $0x38] sm:$0xff]  ;;  %v324_v28 = vld [vmem:[#allocation7 + $0x30] sm:$0xff]  ;;  %s811_s26 = scalar_lea.vmem %s810_s24, 512  ;;  %p812_p0 = scmp.lt.s32.totalorder %s504_s7, %s810_s24 }
  0x65   : > { %368 = vmatpush1.msra.mxu0 %v342_v9  ;;  %v323_v29 = vld [vmem:[#allocation7 + $0x28] sm:$0xff]  ;;  %v322_v30 = vld [vmem:[#allocation7 + $0x20] sm:$0xff]  ;;  %v321_v31 = vld [vmem:[#allocation7 + $0x18] sm:$0xff]  ;;  %p808_p10 = pneg %p807_p7  ;;  %p813_p3 = scmp.lt.s32.totalorder %s811_s26, %s805_s14 }
  0x66   : > { %369 = vmatprep.subr.mxu0 %v341_v10  ;;  %v320_v32 = vld [vmem:[#allocation7 + $0x10] sm:$0xff]  ;;  %v319_v33 = vld [vmem:[#allocation7 + $0x8] sm:$0xff]  ;;  %v318_v34 = vld [vmem:[#allocation7] sm:$0xff] }
  0x67   : > { %370 = vmatpush1.msra.mxu0 %v340_v11  ;;  %v619_v46 = vld [vmem:[%s1114_s3] ss:$0 sm:$0xff]  ;;  %v620_v50 = vld [vmem:[%s1114_s3 + $0x1] ss:$0 sm:$0xff]  ;;  %p814_p2 = por %p813_p3, %p812_p0 }
  0x68   : > { %371 = vmatprep.subr.mxu0 %v339_v12  ;;  %v284_v57 = vld [vmem:[#allocation9] ss:$4 sm:$0x3]  ;;  %v286_v15 = vld [vmem:[#allocation9 + $0x1] ss:$4 sm:$0x3] }
  0x69   : > { %372 = vmatpush1.msra.mxu0 %v338_v13  ;;  %v354_v59 = vrot.slane %v284_v57, %v353_v56  ;;  %v358_v60 = vrot.slane %v284_v57, %v357_v58  ;;  %p815_p9 = pnand %p814_p2, %p808_p10 }
  0x6a   : > { %373 = vmatprep.subr.mxu0 %v337_v14 }
  0x6b   : > { %374 = vmatpush1.msra.mxu0 %v336_v16  ;;  %v455_v16 = vrot.slane %v286_v15, %v353_v56 }
  0x6c   : > { %375 = vmatprep.subr.mxu0 %v335_v17  ;;  %v459_v17 = vrot.slane %v286_v15, %v357_v58 }
  0x6d   : > { %376 = vmatpush1.msra.mxu0 %v334_v18  ;;  %v288_v18 = vld [vmem:[#allocation9 + $0x2] ss:$4 sm:$0x3] }
  0x6e   : > { %377 = vmatprep.subr.mxu0 %v333_v19 }
  0x6f   : > { %378 = vmatpush1.msra.mxu0 %v332_v20  ;;  %v464_v20 = vstv %s618_s28 }
  0x70   : > { %379 = vmatprep.subr.mxu0 %v331_v21  ;;  %v475_v21 = vrot.slane %v288_v18, %v353_v56 }
  0x71   : > { %380 = vmatpush1.msra.mxu0 %v330_v22  ;;  %v479_v22 = vrot.slane %v288_v18, %v357_v58 }
  0x72   : > { %381 = vmatprep.subr.mxu0 %v329_v23 }
  0x73   : > { %382 = vmatpush1.msra.mxu0 %v328_v24 }
  0x74   : > { %383 = vmatprep.subr.mxu0 %v327_v25 }
  0x75   : > { %384 = vmatpush1.msra.mxu0 %v326_v26 }
  0x76   : > { %385 = vmatprep.subr.mxu0 %v325_v27 }
  0x77   : > { %386 = vmatpush1.msra.mxu0 %v324_v28 }
  0x78   : > { %387 = vmatprep.subr.mxu0 %v323_v29 }
  0x79   : > { %388 = vmatpush1.msra.mxu0 %v322_v30 }
  0x7a   : > { %389 = vmatprep.subr.mxu0 %v321_v31 }
  0x7b   : > { %390 = vmatpush1.msra.mxu0 %v320_v32 }
  0x7c   : > { %391 = vmatprep.subr.mxu0 %v319_v33 }
  0x7d   : > { %392 = vmatpush1.msra.mxu0 %v318_v34 }
  0xe6   : > { %v290_v35 = vpop.xlane.xlu0 %289 }
  0xe7   : > { %v294_v36 = vmul.f32 0.0078125, %v290_v35 }
  0xe9   : > { %v296_v38 = vmul.f32 %v294_v36, %v294_v36  ;;  %v303_v44 = vsub.f32 %v1056_v0, %v294_v36 }
  0xea   : > { %v293_v37 = vpop.xlane.xlu0 %292 }
  0xeb   : > { %v295_v39 = vmul.f32 0.0078125, %v293_v37 }
  0xed   : > { %v297_v40 = vsub.f32 %v295_v39, %v296_v38 }
  0xef   : > { %v298_v41 = vmax.f32 %v297_v40, 0.0 }
  0xf1   : > { %v299_v42 = vadd.f32 1e-05, %v298_v41 }
  0xf3   : > { %710 = vrsqrt.f32 %v299_v42 }
 0x100   : > { %v711_v45 = vpop.eup %710 }
 0x101   : > { %v304_v48 = vmul.f32 %v711_v45, %v303_v44 }
 0x103   : > { %v309_v49 = vmul.f32 %v619_v46, %v304_v48 }
 0x105   : > { %v310_v51 = vadd.f32 %v309_v49, %v302_v47 }
 0x107   : > { %v315_v52 = vadd.f32 %v620_v50, %v310_v51 }
 0x109   : > { %v621_v53 = vclamps-f32 %v315_v52, 10.0 }
 0x10b   : > { %426 = vmatmul.mubr.f32.vlgmr.msra.gmra.mxu0 %v621_v53 }
 0x1cb   : > { %v427_v61 = vpop.f32.mrf.mxu0 }
 0x1cc   : > { %v428_v62 = vadd.f32 %v427_v61, %v354_v59 }
 0x1cd   : > { %v429_v63 = vpop.f32.mrf.mxu0 }
 0x1ce   : > { %v430_v0 = vadd.f32 %v429_v63, %v358_v60  ;;  %v622_v1 = vclamps-f32 %v428_v62, 60.0 }
 0x1d0   : > { %v623_v2 = vclamps-f32 %v430_v0, 60.0  ;;  %v439_v5 = vmul.f32 %v622_v1, %v622_v1 }
 0x1d2   : > { %v436_v3 = vadd.f32 %v623_v2, %v622_v1  ;;  %v440_v4 = vmul.f32 %v623_v2, %v623_v2 }
 0x1d4   : > { %437 = vadd.xlane.f32.xlu1 %v436_v3  ;;  %v441_v6 = vadd.f32 %v440_v4, %v439_v5 }
 0x1d8   : > { %442 = vadd.xlane.f32.xlu1 %v441_v6 }
 0x25d   : > { %v438_v7 = vpop.xlane.xlu1 %437 }
 0x25e   : > { %v444_v8 = vmul.f32 0.00390625, %v438_v7 }
 0x260   : > { %v446_v10 = vmul.f32 %v444_v8, %v444_v8 }
 0x261   : > { %v443_v9 = vpop.xlane.xlu1 %442 }
 0x262   : > { %v445_v11 = vmul.f32 0.00390625, %v443_v9 }
 0x264   : > { %v447_v12 = vsub.f32 %v445_v11, %v446_v10 }
 0x266   : > { %v448_v13 = vmax.f32 %v447_v12, 0.0 }
 0x268   : > { %v449_v14 = vadd.f32 1e-05, %v448_v13 }
 0x26a   : > { %712 = vrsqrt.f32 %v449_v14 }
 0x277   : > { %v713_v19 = vpop.eup %712 }
 0x278   : > { %v462_v23 = vmul.f32 %v713_v19, %v455_v16  ;;  %v463_v24 = vmul.f32 %v713_v19, %v459_v17 }
 0x27a   : > { %v465_v25 = vadd.f32 %v464_v20, %v462_v23  ;;  %v466_v26 = vadd.f32 %v464_v20, %v463_v24  ;;  %v469_v27 = vmul.f32 %v462_v23, %v444_v8  ;;  %v470_v28 = vmul.f32 %v463_v24, %v444_v8 }
 0x27c   : > { %v467_v29 = vmul.f32 %v622_v1, %v465_v25  ;;  %v468_v30 = vmul.f32 %v623_v2, %v466_v26  ;;  %v482_v31 = vsub.f32 %v475_v21, %v469_v27  ;;  %v483_v32 = vsub.f32 %v479_v22, %v470_v28 }
 0x27e   : > { %v484_v33 = vadd.f32 %v482_v31, %v467_v29  ;;  %v485_v34 = vadd.f32 %v483_v32, %v468_v30 }
 0x280   : > { %486 = vst [vmem:[%s278_s9] sm:$0xff] %v484_v33  ;;  %487 = vst [vmem:[%s278_s9 + $0x8] sm:$0xff] %v485_v34 }
 0x281   : > { %818 = shalt.err (!%p815_p9)
}
 0x282   : > { %s819_s11 = scalar_lea.hbm %s1074_s17, 256  ;;  %s823_s15 = scalar_lea.hbm %s1116_s5, 512 }
 0x283   : > { %p820_p12 = scmp.ne.s32.totalorder %s1074_s17, %s819_s11  ;;  %p824_p4 = scmp.lt.s32.totalorder %s1074_s17, %s1116_s5 }
 0x284   : > { %p825_p6 = scmp.lt.s32.totalorder %s823_s15, %s819_s11 }
 0x285   : > { %p821_p13 = pnand %p820_p12, %p1133_p11 }
 0x286   : > { %p826_p8 = por %p825_p6, %p824_p4 }
 0x287   : > { %p822_p1 = pneg %p821_p13 }
 0x289   : > { %p827_p5 = pnand %p826_p8, %p822_p1 }
 0x28b   : > { %830 = shalt.err (!%p827_p5)
}
 0x28c   : > { %644 = dma.vmem_to_hbm [thread:$0]  (%p1133_p11), %s504_s7, 256, %s1074_s17, %s489_s27  }
 0x28d PF: > { %s515_s6 = sand.u32 1, %s865_s18   ;;  %p1134_p7 = scmp.ne.s32.totalorder %s1122_s25, 0 }
 0x28e   : > { %p1135_p10 = scmp.ge.s32.totalorder %s877_s21, 2  ;;  %s516_s9 = scalar_lea.sflag [#allocation4], %s515_s6 }
 0x290   : > { %p661_p0 = pnand %p1135_p10, %p1134_p7 }
 0x292   : > { %p662_p3 = pneg %p661_p0 }
 0x294   : > { %860 = dma.done.wait (%p662_p3), %s516_s9, 256  }
 0x295   : > { %862 = vsyncadd (%p662_p3), %s516_s9, 4294967040  ;;  %p20_p2 = scmp.ge.s32.totalorder %s994_s23, 4   ;;  %s1136_s18 = smov %s869_s19 }
 0x296   : > { %s1137_s19 = smov %s873_s20  ;;  %s1138_s20 = smov %s1004_s29 }
 0x297   : > { %s1139_s21 = smov %s994_s23  ;;  %22 = sbr.rel (!%p20_p2) target bundleno = 7 (0x7), region = 100 }
 0x29c   :  { %521 = vsyncpa [#allocation3], 1 }
 0x29d   :  { %523 = vsyncpa [#allocation3 + $0x1], 1 }
 0x29e   :  { %524 = vsyncpa [#allocation8], 1 }
 0x29f   :  { %525 = vsyncpa [#allocation4], 1 }
 0x2a0   :  { %527 = vsyncpa [#allocation4 + $0x1], 1 }
 0x2a1   :  { %528 = vsyncpa [#allocation5], 1 }
 0x2a2   :  { %530 = vsyncpa [#allocation5 + $0x1], 1 }

</bundles_post_ra>
